<compile_context>
chip_gen: v7x
topology: tpu7x:2x2x1
jax: 0.10.0
libtpu: 0.0.40
codegen_flags: <defaults>
</compile_context>

<pallas_src>
import numpy as np
import jax
import jax.numpy as jnp
from jax.experimental import pallas as pl
from jax.experimental.pallas import tpu as pltpu

PYRAMIDS = (1, 2, 3, 6)
BN_EPS = 1e-5
NBINS = sum(b * b for b in PYRAMIDS)      # 1 + 4 + 9 + 36 = 50


# ---------------------------------------------------------------------------
# Precomputed linear operators (PyTorch semantics)
# ---------------------------------------------------------------------------
def adaptive_pool_matrix(size, nbins):
    """P[i, h] s.t. pooled[i] = sum_h P[i,h] * x[h]  (AdaptiveAvgPool2d rule)."""
    P = np.zeros((nbins, size), dtype=np.float32)
    for i in range(nbins):
        s = (i * size) // nbins
        e = -((-(i + 1) * size) // nbins)  # ceil((i+1)*size/nbins)
        P[i, s:e] = 1.0 / (e - s)
    return P


def bilinear_up_matrix(nbins, size):
    """U[h, i] s.t. out[h] = sum_i U[h,i] * y[i]  (bilinear, align_corners=True)."""
    U = np.zeros((size, nbins), dtype=np.float32)
    if nbins == 1 or size == 1:
        U[:, 0] = 1.0
        return U
    scale = (nbins - 1) / (size - 1)
    for h in range(size):
        src = h * scale
        i0 = min(int(np.floor(src)), nbins - 1)
        i1 = min(i0 + 1, nbins - 1)
        f = src - i0
        U[h, i0] += 1.0 - f
        U[h, i1] += f
    return U


# ---------------------------------------------------------------------------
# Kernels
# ---------------------------------------------------------------------------
def _ppm_fused_kernel(x_ref, pcat_ref, ucat_ref, ws_ref, bs_ref, mask_ref,
                      wf0_ref, wf1_ref, bf_ref, out_ref):
    """Whole-HW single-pass kernel (one batch element per grid step)."""
    f32 = jnp.float32
    x = x_ref[0].astype(jnp.bfloat16)                               # in-kernel bf16 cast

    # Stage 1: all four adaptive average pools as ONE HW-wide matmul.
    pooled = jnp.dot(x, pcat_ref[...], preferred_element_type=f32)  # (C, 50)

    # Stage 2: stacked branch Conv+BN+ReLU + block-diagonal mask (tiny, f32).
    y = jnp.dot(ws_ref[...], pooled, preferred_element_type=f32) + bs_ref[...]
    y = jnp.maximum(y, 0.0) * mask_ref[...]                         # (4*Cb, 50)

    # Stage 3: branch columns of the final conv applied in bin-space.
    z = jnp.dot(wf1_ref[...], y, preferred_element_type=f32)        # (O, 50)

    # Stage 4: identity path + ONE fused upsample matmul, ReLU, cast.
    acc = jnp.dot(wf0_ref[...], x, preferred_element_type=f32)      # (O, HW)
    acc = acc + jnp.dot(z.astype(jnp.bfloat16), ucat_ref[...],
                        preferred_element_type=f32)
    out_ref[0] = jnp.maximum(acc + bf_ref[...], 0.0).astype(out_ref.dtype)


def _ppm_binspace_kernel(x_ref, pcat_ref, ws_ref, bs_ref, mask_ref, wf1_ref,
                         z_ref, pooled_acc):
    """Phase A of the tiled path: reduce HW tiles into bin-space z (O, 50)."""
    f32 = jnp.float32
    k = pl.program_id(1)

    @pl.when(k == 0)
    def _():
        pooled_acc[...] = jnp.zeros_like(pooled_acc)

    x = x_ref[0].astype(jnp.bfloat16)                                # (C, T)
    pooled_acc[...] += jnp.dot(x, pcat_ref[...], preferred_element_type=f32)

    @pl.when(k == pl.num_programs(1) - 1)
    def _():
        y = jnp.dot(ws_ref[...], pooled_acc[...],
                    preferred_element_type=f32) + bs_ref[...]
        y = jnp.maximum(y, 0.0) * mask_ref[...]
        z = jnp.dot(wf1_ref[...], y, preferred_element_type=f32)     # (O, 50)
        z_ref[0] = z.astype(z_ref.dtype)                             # bf16 cast hoisted here


def _ppm_stream_kernel(x_ref, z_ref, ucat_ref, wf0_ref, bf_ref, out_ref):
    """Phase B of the tiled path: stream one (O, T) output tile per grid step."""
    f32 = jnp.float32
    x = x_ref[0].astype(jnp.bfloat16)                                # (C, T)
    acc = jnp.dot(wf0_ref[...], x, preferred_element_type=f32)       # (O, T)
    acc = acc + jnp.dot(z_ref[0], ucat_ref[...], preferred_element_type=f32)
    out_ref[0] = jnp.maximum(acc + bf_ref[...], 0.0).astype(out_ref.dtype)


# ---------------------------------------------------------------------------
# VMEM budgeting / path selection
# ---------------------------------------------------------------------------
def _vmem_budget_bytes():
    try:
        kind = jax.devices()[0].device_kind.lower()
    except Exception:
        kind = ""
    if "v7" in kind:
        return 48 * 1024 * 1024        # 64 MiB physical; leave compiler headroom
    if "v5" in kind or "v6" in kind:
        return 100 * 1024 * 1024       # 128 MiB physical
    return 48 * 1024 * 1024            # conservative default


def _whole_hw_bytes(C, O, HW, out_itemsize):
    x_in = 2 * C * HW * 4                       # double-buffered f32 input block
    out = 2 * O * HW * out_itemsize             # double-buffered output block
    acc = O * HW * 4                            # f32 accumulator temporaries
    consts = 2 * (HW * NBINS * 2) * 2           # p_cat + u_cat (bf16, double-buffered)
    return x_in + out + acc + consts + (1 << 20)


def _tiled_bytes(C, O, T, out_itemsize):
    # Phase B dominates Phase A (adds the (O, T) accumulator + output stream).
    x_in = 2 * C * T * 4
    out = 2 * O * T * out_itemsize
    acc = O * T * 4
    consts = 2 * NBINS * T * 2 + C * O * 2
    return x_in + out + acc + consts + (1 << 20)


def _pick_hw_tile(HW, C, O, out_itemsize, budget):
    if HW % 128 != 0:
        return None
    best = None
    t = 128
    while t <= HW:
        if HW % t == 0 and _tiled_bytes(C, O, t, out_itemsize) <= budget:
            best = t
        t += 128
    return best


# ---------------------------------------------------------------------------
# Wrappers
# ---------------------------------------------------------------------------
def _ppm_whole(x_flat, packed, N, C, O, HW, out_dtype, vmem_limit):
    const_names = ("p_cat", "u_cat", "w_stack", "b_stack", "mask",
                   "wf0", "wf1", "bf")
    consts = [packed[k] for k in const_names]

    in_specs = [pl.BlockSpec((1, C, HW), lambda n: (n, 0, 0))]
    in_specs += [pl.BlockSpec(c.shape, lambda n: (0, 0)) for c in consts]

    return pl.pallas_call(
        _ppm_fused_kernel,
        out_shape=jax.ShapeDtypeStruct((N, O, HW), out_dtype),
        grid_spec=pltpu.PrefetchScalarGridSpec(
            num_scalar_prefetch=0,
            grid=(N,),
            in_specs=in_specs,
            out_specs=pl.BlockSpec((1, O, HW), lambda n: (n, 0, 0)),
        ),
        compiler_params=pltpu.CompilerParams(
            dimension_semantics=("parallel",),
            vmem_limit_bytes=vmem_limit),
    )(x_flat, *consts)


def _ppm_tiled(x_flat, packed, N, C, O, HW, T, out_dtype, vmem_limit):
    nk = HW // T

    # ---- Phase A: bin-space reduction over HW tiles -> z (N, O, NBINS) bf16
    a_consts = (packed["w_stack"], packed["b_stack"], packed["mask"],
                packed["wf1"])
    a_in_specs = [
        pl.BlockSpec((1, C, T), lambda n, k: (n, 0, k)),
        pl.BlockSpec((T, NBINS), lambda n, k: (k, 0)),
    ]
    a_in_specs += [pl.BlockSpec(c.shape, lambda n, k: (0, 0)) for c in a_consts]

    z = pl.pallas_call(
        _ppm_binspace_kernel,
        out_shape=jax.ShapeDtypeStruct((N, O, NBINS), jnp.bfloat16),
        grid_spec=pltpu.PrefetchScalarGridSpec(
            num_scalar_prefetch=0,
            grid=(N, nk),
            in_specs=a_in_specs,
            out_specs=pl.BlockSpec((1, O, NBINS), lambda n, k: (n, 0, 0)),
            scratch_shapes=[pltpu.VMEM((C, NBINS), jnp.float32)],
        ),
        compiler_params=pltpu.CompilerParams(
            dimension_semantics=("parallel", "arbitrary"),
            vmem_limit_bytes=vmem_limit),
    )(x_flat, packed["p_cat"], *a_consts)

    # ---- Phase B: stream output tiles (fully parallel: batch x HW tiles)
    b_in_specs = [
        pl.BlockSpec((1, C, T), lambda n, j: (n, 0, j)),
        pl.BlockSpec((1, O, NBINS), lambda n, j: (n, 0, 0)),
        pl.BlockSpec((NBINS, T), lambda n, j: (0, j)),
        pl.BlockSpec(packed["wf0"].shape, lambda n, j: (0, 0)),
        pl.BlockSpec(packed["bf"].shape, lambda n, j: (0, 0)),
    ]

    return pl.pallas_call(
        _ppm_stream_kernel,
        out_shape=jax.ShapeDtypeStruct((N, O, HW), out_dtype),
        grid_spec=pltpu.PrefetchScalarGridSpec(
            num_scalar_prefetch=0,
            grid=(N, nk),
            in_specs=b_in_specs,
            out_specs=pl.BlockSpec((1, O, T), lambda n, j: (n, 0, j)),
        ),
        compiler_params=pltpu.CompilerParams(
            dimension_semantics=("parallel", "parallel"),
            vmem_limit_bytes=vmem_limit),
    )(x_flat, z, packed["u_cat"], packed["wf0"], packed["bf"])


def pyramid_pooling_module(x, packed, *, out_dtype=jnp.bfloat16,
                           force_tiled=False, hw_tile=None):
    """x: (N, C, H, W) float32 -> (N, O, H, W) out_dtype (bf16 by default)."""
    N, C, H, W = x.shape
    HW = H * W
    O = packed["wf0"].shape[0]
    budget = _vmem_budget_bytes()
    out_isz = jnp.dtype(out_dtype).itemsize

    x_flat = x.reshape(N, C, HW)   # keep producer dtype; bf16 cast happens in-kernel

    use_whole = (not force_tiled) and (_whole_hw_bytes(C, O, HW, out_isz) <= budget)
    tile = None
    if not use_whole:
        if hw_tile is not None:
            assert HW % hw_tile == 0 and hw_tile % 128 == 0, \
                "hw_tile must divide H*W and be a multiple of 128"
            tile = hw_tile
        else:
            tile = _pick_hw_tile(HW, C, O, out_isz, budget)
        if tile is None:
            use_whole = True

    if use_whole:
        out = _ppm_whole(x_flat, packed, N, C, O, HW, out_dtype, budget)
    else:
        out = _ppm_tiled(x_flat, packed, N, C, O, HW, tile, out_dtype, budget)

    return out.reshape(N, O, H, W)


# ---------------------------------------------------------------------------
# Deterministic parameter initialization (Conv + folded BatchNorm, eval mode)
# ---------------------------------------------------------------------------
def init_params(key, in_channels, out_channels, H, W):
    nb = len(PYRAMIDS)
    Cb = in_channels // nb
    keys = jax.random.split(key, 5 * nb + 5)
    kit = iter(keys)

    def bn(k1, k2, k3, k4, ch):
        gamma = jax.random.uniform(k1, (ch,), minval=0.5, maxval=1.5)
        beta = jax.random.normal(k2, (ch,)) * 0.1
        mean = jax.random.normal(k3, (ch,)) * 0.1
        var = jax.random.uniform(k4, (ch,), minval=0.5, maxval=1.5)
        return gamma, beta, mean, var

    wbs, bbs = [], []
    for _b in PYRAMIDS:
        w = jax.random.normal(next(kit), (Cb, in_channels)) * 0.3
        g, be, m, v = bn(next(kit), next(kit), next(kit), next(kit), Cb)
        scale = g / jnp.sqrt(v + BN_EPS)
        wbs.append((w * scale[:, None]).astype(jnp.float32))
        bbs.append((be - scale * m).reshape(Cb, 1).astype(jnp.float32))

    wf_raw = jax.random.normal(next(kit), (out_channels, 2 * in_channels)) * 0.3
    g, be, m, v = bn(next(kit), next(kit), next(kit), next(kit), out_channels)
    scale = g / jnp.sqrt(v + BN_EPS)
    wf = (wf_raw * scale[:, None]).astype(jnp.float32)
    bf = (be - scale * m).reshape(out_channels, 1).astype(jnp.float32)

    pool_mats, up_mats = [], []
    for b in PYRAMIDS:
        Ph = adaptive_pool_matrix(H, b)
        Pw = adaptive_pool_matrix(W, b)
        pool_mats.append(jnp.asarray(np.kron(Ph, Pw).T))   # (HW, b*b)
        Uh = bilinear_up_matrix(b, H)
        Uw = bilinear_up_matrix(b, W)
        up_mats.append(jnp.asarray(np.kron(Uh, Uw).T))     # (b*b, HW)

    return pool_mats, up_mats, wbs, bbs, wf, bf


def pack_params(params):
    """Host-side fusion/concatenation of all constant operands."""
    pool_mats, up_mats, wbs, bbs, wf, bf = params
    Cb, C = wbs[0].shape
    nb = len(PYRAMIDS)

    p_cat = jnp.concatenate(pool_mats, axis=1)      # (HW, 50)
    u_cat = jnp.concatenate(up_mats, axis=0)        # (50, HW)
    w_stack = jnp.concatenate(wbs, axis=0)          # (nb*Cb, C)
    b_stack = jnp.concatenate(bbs, axis=0)          # (nb*Cb, 1)

    mask = np.zeros((nb * Cb, NBINS), dtype=np.float32)
    off = 0
    for i, b in enumerate(PYRAMIDS):
        mask[i * Cb:(i + 1) * Cb, off:off + b * b] = 1.0
        off += b * b

    return dict(
        p_cat=p_cat.astype(jnp.bfloat16),
        u_cat=u_cat.astype(jnp.bfloat16),
        w_stack=w_stack.astype(jnp.float32),
        b_stack=b_stack.astype(jnp.float32),
        mask=jnp.asarray(mask),
        wf0=wf[:, :C].astype(jnp.bfloat16),          # identity-path final conv
        wf1=wf[:, C:].astype(jnp.float32),           # branch-path final conv
        bf=bf.astype(jnp.float32),
    )


# ---------------------------------------------------------------------------
# Pure-JAX references
# ---------------------------------------------------------------------------
def ppm_reference_f32(x, params):
    """Per-branch, full f32 — mirrors the PyTorch module math exactly."""
    N, C, H, W = x.shape
    pool_mats, up_mats, wbs, bbs, wf, bf = params
    xf = x.reshape(N, C, H * W)
    feats = [xf]
    for pm, um, wb, bb in zip(pool_mats, up_mats, wbs, bbs):
        pooled = jnp.einsum('nch,hb->ncb', xf, pm)
        y = jnp.maximum(jnp.einsum('oc,ncb->nob', wb, pooled) + bb[None], 0.0)
        feats.append(jnp.einsum('nob,bh->noh', y, um))
    cat = jnp.concatenate(feats, axis=1)
    out = jnp.maximum(jnp.einsum('oc,nch->noh', wf, cat) + bf[None], 0.0)
    return out.reshape(N, -1, H, W)


def ppm_reference_packed(x, packed):
    """Same fused math / same bf16 cast points as the kernel, in plain JAX (f32 out)."""
    f32 = jnp.float32
    N, C, H, W = x.shape
    xf = x.reshape(N, C, H * W).astype(jnp.bfloat16)
    pooled = jnp.einsum('nch,hj->ncj', xf, packed["p_cat"],
                        preferred_element_type=f32)
    y = jnp.einsum('kc,ncj->nkj', packed["w_stack"], pooled,
                   preferred_element_type=f32) + packed["b_stack"][None]
    y = jnp.maximum(y, 0.0) * packed["mask"][None]
    z = jnp.einsum('ok,nkj->noj', packed["wf1"], y, preferred_element_type=f32)
    acc = jnp.einsum('oc,nch->noh', packed["wf0"], xf, preferred_element_type=f32)
    acc = acc + jnp.einsum('noj,jh->noh', z.astype(jnp.bfloat16), packed["u_cat"],
                           preferred_element_type=f32)
    out = jnp.maximum(acc + packed["bf"][None], 0.0)
    return out.reshape(N, -1, H, W)


if __name__ == "__main__":
    key = jax.random.PRNGKey(0)
    kx, kp = jax.random.split(key)

    N, C, H, W = 2, 4, 16, 16   # in_channels=4 (divisible by len(pyramids)=4)
    O = 8                       # out_channels

    x = jax.random.normal(kx, (N, C, H, W), dtype=jnp.float32)
    params = init_params(kp, C, O, H, W)
    packed = pack_params(params)

    # Path 1: whole-HW fused kernel (auto-selected at this size).
    out = jax.block_until_ready(pyramid_pooling_module(x, packed))
    # Path 2: force the two-phase HW-tiled path (what large v7x shapes take).
    out_tiled = jax.block_until_ready(
        pyramid_pooling_module(x, packed, force_tiled=True, hw_tile=128))

    out_f = np.asarray(out.astype(jnp.float32))
    out_t = np.asarray(out_tiled.astype(jnp.float32))

    ref_packed = np.asarray(ppm_reference_packed(x, packed))
    ref_f32 = np.asarray(ppm_reference_f32(x, params))

    # Tight check: kernels vs identical fused math in plain JAX
    # (tolerance covers the deliberate bf16 rounding of the kernel output).
    np.testing.assert_allclose(out_f, ref_packed, rtol=1e-2, atol=1e-2)
    np.testing.assert_allclose(out_t, ref_packed, rtol=1e-2, atol=1e-2)
    np.testing.assert_allclose(out_t, out_f, rtol=1e-2, atol=1e-2)

    # Semantic check: fused bf16 kernels vs per-branch full-f32 module math.
    np.testing.assert_allclose(out_f, ref_f32, rtol=5e-2, atol=5e-2)
    np.testing.assert_allclose(out_t, ref_f32, rtol=5e-2, atol=5e-2)

    print("KERNEL_OK")
</pallas_src>

<mosaic_0001>
module attributes {stable_mosaic.version = 11 : i64} {
  func.func @_ppm_fused_kernel(%arg0: i32, %arg1: memref<1x4x256xf32, #tpu.memory_space<vmem>>, %arg2: memref<256x50xbf16, #tpu.memory_space<vmem>>, %arg3: memref<50x256xbf16, #tpu.memory_space<vmem>>, %arg4: memref<4x4xf32, #tpu.memory_space<vmem>>, %arg5: memref<4x1xf32, #tpu.memory_space<vmem>>, %arg6: memref<4x50xf32, #tpu.memory_space<vmem>>, %arg7: memref<8x4xbf16, #tpu.memory_space<vmem>>, %arg8: memref<8x4xf32, #tpu.memory_space<vmem>>, %arg9: memref<8x1xf32, #tpu.memory_space<vmem>>, %arg10: memref<1x8x256xbf16, #tpu.memory_space<vmem>>) attributes {dimension_semantics = [#tpu.dimension_semantics<parallel>], iteration_bounds = array<i64: 2>, scalar_prefetch = 0 : i64, scratch_operands = 0 : i64, tpu.core_type = #tpu.core_type<tc>, window_params = [{transform_indices = @transform_0, window_bounds = array<i64: 1, 4, 256>}, {pipeline_mode = #tpu.pipeline_mode<synchronous>, transform_indices = @transform_1, window_bounds = array<i64: 256, 50>}, {pipeline_mode = #tpu.pipeline_mode<synchronous>, transform_indices = @transform_2, window_bounds = array<i64: 50, 256>}, {pipeline_mode = #tpu.pipeline_mode<synchronous>, transform_indices = @transform_3, window_bounds = array<i64: 4, 4>}, {pipeline_mode = #tpu.pipeline_mode<synchronous>, transform_indices = @transform_4, window_bounds = array<i64: 4, 1>}, {pipeline_mode = #tpu.pipeline_mode<synchronous>, transform_indices = @transform_5, window_bounds = array<i64: 4, 50>}, {pipeline_mode = #tpu.pipeline_mode<synchronous>, transform_indices = @transform_6, window_bounds = array<i64: 8, 4>}, {pipeline_mode = #tpu.pipeline_mode<synchronous>, transform_indices = @transform_7, window_bounds = array<i64: 8, 4>}, {pipeline_mode = #tpu.pipeline_mode<synchronous>, transform_indices = @transform_8, window_bounds = array<i64: 8, 1>}, {transform_indices = @transform_9, window_bounds = array<i64: 1, 8, 256>}]} {
    %c0 = arith.constant 0 : index
    %c0_0 = arith.constant 0 : index
    %c0_1 = arith.constant 0 : index
    %0 = vector.load %arg1[%c0, %c0_0, %c0_1] : memref<1x4x256xf32, #tpu.memory_space<vmem>>, vector<1x4x256xf32>
    %1 = vector.shape_cast %0 : vector<1x4x256xf32> to vector<4x256xf32>
    %2 = arith.truncf %1 : vector<4x256xf32> to vector<4x256xbf16>
    %c0_2 = arith.constant 0 : index
    %c0_3 = arith.constant 0 : index
    %3 = vector.load %arg2[%c0_2, %c0_3] : memref<256x50xbf16, #tpu.memory_space<vmem>>, vector<256x50xbf16>
    %cst = arith.constant dense<0.000000e+00> : vector<4x50xf32>
    %4 = tpu.matmul %2, %3, %cst {dimension_numbers = #tpu.dot_dimension_numbers<[1], [0], [0], [1], [0, 0, 1, 1], [], []>} : vector<4x256xbf16>, vector<256x50xbf16>, vector<4x50xf32> -> vector<4x50xf32>
    %c0_4 = arith.constant 0 : index
    %c0_5 = arith.constant 0 : index
    %5 = vector.load %arg4[%c0_4, %c0_5] : memref<4x4xf32, #tpu.memory_space<vmem>>, vector<4x4xf32>
    %cst_6 = arith.constant dense<0.000000e+00> : vector<4x50xf32>
    %6 = tpu.matmul %5, %4, %cst_6 {dimension_numbers = #tpu.dot_dimension_numbers<[1], [0], [0], [1], [0, 0, 1, 1], [], []>} : vector<4x4xf32>, vector<4x50xf32>, vector<4x50xf32> -> vector<4x50xf32>
    %c0_7 = arith.constant 0 : index
    %c0_8 = arith.constant 0 : index
    %7 = vector.load %arg5[%c0_7, %c0_8] : memref<4x1xf32, #tpu.memory_space<vmem>>, vector<4x1xf32>
    %8 = vector.broadcast %7 : vector<4x1xf32> to vector<4x50xf32>
    %9 = arith.addf %6, %8 : vector<4x50xf32>
    %cst_9 = arith.constant 0.000000e+00 : f32
    %10 = vector.broadcast %cst_9 : f32 to vector<4x50xf32>
    %11 = arith.maximumf %9, %10 : vector<4x50xf32>
    %c0_10 = arith.constant 0 : index
    %c0_11 = arith.constant 0 : index
    %12 = vector.load %arg6[%c0_10, %c0_11] : memref<4x50xf32, #tpu.memory_space<vmem>>, vector<4x50xf32>
    %13 = arith.mulf %11, %12 : vector<4x50xf32>
    %c0_12 = arith.constant 0 : index
    %c0_13 = arith.constant 0 : index
    %14 = vector.load %arg8[%c0_12, %c0_13] : memref<8x4xf32, #tpu.memory_space<vmem>>, vector<8x4xf32>
    %cst_14 = arith.constant dense<0.000000e+00> : vector<8x50xf32>
    %15 = tpu.matmul %14, %13, %cst_14 {dimension_numbers = #tpu.dot_dimension_numbers<[1], [0], [0], [1], [0, 0, 1, 1], [], []>} : vector<8x4xf32>, vector<4x50xf32>, vector<8x50xf32> -> vector<8x50xf32>
    %c0_15 = arith.constant 0 : index
    %c0_16 = arith.constant 0 : index
    %16 = vector.load %arg7[%c0_15, %c0_16] : memref<8x4xbf16, #tpu.memory_space<vmem>>, vector<8x4xbf16>
    %cst_17 = arith.constant dense<0.000000e+00> : vector<8x256xf32>
    %17 = tpu.matmul %16, %2, %cst_17 {dimension_numbers = #tpu.dot_dimension_numbers<[1], [0], [0], [1], [0, 0, 1, 1], [], []>} : vector<8x4xbf16>, vector<4x256xbf16>, vector<8x256xf32> -> vector<8x256xf32>
    %18 = arith.truncf %15 : vector<8x50xf32> to vector<8x50xbf16>
    %c0_18 = arith.constant 0 : index
    %c0_19 = arith.constant 0 : index
    %19 = vector.load %arg3[%c0_18, %c0_19] : memref<50x256xbf16, #tpu.memory_space<vmem>>, vector<50x256xbf16>
    %cst_20 = arith.constant dense<0.000000e+00> : vector<8x256xf32>
    %20 = tpu.matmul %18, %19, %cst_20 {dimension_numbers = #tpu.dot_dimension_numbers<[1], [0], [0], [1], [0, 0, 1, 1], [], []>} : vector<8x50xbf16>, vector<50x256xbf16>, vector<8x256xf32> -> vector<8x256xf32>
    %21 = arith.addf %17, %20 : vector<8x256xf32>
    %c0_21 = arith.constant 0 : index
    %c0_22 = arith.constant 0 : index
    %22 = vector.load %arg9[%c0_21, %c0_22] : memref<8x1xf32, #tpu.memory_space<vmem>>, vector<8x1xf32>
    %23 = vector.broadcast %22 : vector<8x1xf32> to vector<8x256xf32>
    %24 = arith.addf %21, %23 : vector<8x256xf32>
    %cst_23 = arith.constant 0.000000e+00 : f32
    %25 = vector.broadcast %cst_23 : f32 to vector<8x256xf32>
    %26 = arith.maximumf %24, %25 : vector<8x256xf32>
    %27 = arith.truncf %26 : vector<8x256xf32> to vector<8x256xbf16>
    %c0_24 = arith.constant 0 : index
    %c0_25 = arith.constant 0 : index
    %c0_26 = arith.constant 0 : index
    %28 = vector.load %arg10[%c0_24, %c0_25, %c0_26] : memref<1x8x256xbf16, #tpu.memory_space<vmem>>, vector<1x8x256xbf16>
    %29 = vector.shape_cast %28 : vector<1x8x256xbf16> to vector<8x256xbf16>
    %30 = vector.shape_cast %27 : vector<8x256xbf16> to vector<1x8x256xbf16>
    tpu.vector_store %arg10[%c0_24, %c0_25, %c0_26], %30 {strides = array<i32>} : memref<1x8x256xbf16, #tpu.memory_space<vmem>>, vector<1x8x256xbf16>,
    return
  }
  func.func @transform_0(%arg0: i32) -> (i32, i32, i32) {
    %c0_i32 = arith.constant 0 : i32
    %c0_i32_0 = arith.constant 0 : i32
    %c0_i32_1 = arith.constant 0 : i32
    return %arg0, %c0_i32, %c0_i32_0 : i32, i32, i32
  }
  func.func @transform_1(%arg0: i32) -> (i32, i32) {
    %c0_i32 = arith.constant 0 : i32
    %c0_i32_0 = arith.constant 0 : i32
    %c0_i32_1 = arith.constant 0 : i32
    return %c0_i32, %c0_i32_0 : i32, i32
  }
  func.func @transform_2(%arg0: i32) -> (i32, i32) {
    %c0_i32 = arith.constant 0 : i32
    %c0_i32_0 = arith.constant 0 : i32
    %c0_i32_1 = arith.constant 0 : i32
    return %c0_i32, %c0_i32_0 : i32, i32
  }
  func.func @transform_3(%arg0: i32) -> (i32, i32) {
    %c0_i32 = arith.constant 0 : i32
    %c0_i32_0 = arith.constant 0 : i32
    %c0_i32_1 = arith.constant 0 : i32
    return %c0_i32, %c0_i32_0 : i32, i32
  }
  func.func @transform_4(%arg0: i32) -> (i32, i32) {
    %c0_i32 = arith.constant 0 : i32
    %c0_i32_0 = arith.constant 0 : i32
    %c0_i32_1 = arith.constant 0 : i32
    return %c0_i32, %c0_i32_0 : i32, i32
  }
  func.func @transform_5(%arg0: i32) -> (i32, i32) {
    %c0_i32 = arith.constant 0 : i32
    %c0_i32_0 = arith.constant 0 : i32
    %c0_i32_1 = arith.constant 0 : i32
    return %c0_i32, %c0_i32_0 : i32, i32
  }
  func.func @transform_6(%arg0: i32) -> (i32, i32) {
    %c0_i32 = arith.constant 0 : i32
    %c0_i32_0 = arith.constant 0 : i32
    %c0_i32_1 = arith.constant 0 : i32
    return %c0_i32, %c0_i32_0 : i32, i32
  }
  func.func @transform_7(%arg0: i32) -> (i32, i32) {
    %c0_i32 = arith.constant 0 : i32
    %c0_i32_0 = arith.constant 0 : i32
    %c0_i32_1 = arith.constant 0 : i32
    return %c0_i32, %c0_i32_0 : i32, i32
  }
  func.func @transform_8(%arg0: i32) -> (i32, i32) {
    %c0_i32 = arith.constant 0 : i32
    %c0_i32_0 = arith.constant 0 : i32
    %c0_i32_1 = arith.constant 0 : i32
    return %c0_i32, %c0_i32_0 : i32, i32
  }
  func.func @transform_9(%arg0: i32) -> (i32, i32, i32) {
    %c0_i32 = arith.constant 0 : i32
    %c0_i32_0 = arith.constant 0 : i32
    %c0_i32_1 = arith.constant 0 : i32
    return %arg0, %c0_i32, %c0_i32_0 : i32, i32, i32
  }
}

</mosaic_0001>

<bundles_post_ra>
// kernel: tpu_custom_call.1
= control target key start
LH: loop header
LB: loop body
LE: loop exit
PB: predicated region body
PF: predicated region fallthrough
CT: control target
= control target key end

     0   :  { %14 = vsyncpa [#allocation3], 0  ;;  %s1382_s0 = inlined_call_operand.vmem [shape: f32[2,4,256], index: 0, kind: input, shape index: {}]   ;;  %s1383_s1 = inlined_call_operand.vmem [shape: bf16[256,50], index: 1, kind: input, shape index: {}]   ;;  %s1384_s2 = inlined_call_operand.vmem [shape: bf16[50,256], index: 2, kind: input, shape index: {}]   ;;  %s1385_s3 = inlined_call_operand.vmem [shape: f32[4,4], index: 3, kind: input, shape index: {}]   ;;  %s1386_s4 = inlined_call_operand.vmem [shape: f32[4,1], index: 4, kind: input, shape index: {}]   ;;  %s1387_s5 = inlined_call_operand.vmem [shape: f32[4,50], index: 5, kind: input, shape index: {}]   ;;  %s1388_s6 = inlined_call_operand.vmem [shape: bf16[8,4], index: 6, kind: input, shape index: {}]   ;;  %s1389_s7 = inlined_call_operand.vmem [shape: f32[8,4], index: 7, kind: input, shape index: {}]   ;;  %s1390_s8 = inlined_call_operand.vmem [shape: f32[8,1], index: 8, kind: input, shape index: {}]   ;;  %s1391_s9 = inlined_call_operand.hbm [shape: bf16[2,8,256], index: 9, kind: output, shape index: {}]  }
   0x1   :  { %16 = vsyncpa [#allocation3 + $0x1], 0  ;;  %s1184_s30 = smov 0   ;;  %s1186_s10 = smov 0  }
   0x2   :  { %s1188_s11 = smov 0   ;;  %s1190_s12 = smov 0  }
   0x3 LB: > { %s1205_s13 = sadd.s32 4294967295, %s1128_s12   ;;  %s911_s14 = sadd.s32 4294967294, %s1128_s12   ;;  %s1128_s12 = sphi %s1190_s12, %s1399_s12   ;;  %s1124_s11 = sphi %s1188_s11, %s1398_s11   ;;  %s1120_s10 = sphi %s1186_s10, %s1397_s10   ;;  %s1116_s30 = sphi %s1184_s30, %s1396_s30  }
   0x4   : > { %s1209_s15 = sadd.s32 1, %s1128_s12   ;;  %s223_s16 = sadd.s32 1, %s1124_s11 }
   0x5   : > { %s220_s17 = ssub.s32 %s1128_s12, %s1209_s15  ;;  %p233_p0 = scmp.ne.s32.totalorder %s1124_s11, %s1120_s10 }
   0x6   : > { %p221_p1 = scmp.eq.s32.totalorder %s220_s17, 0  ;;  %p234_p2 = scmp.eq.s32.totalorder %s1205_s13, 1 }
   0x7   : > { %p239_p3 = scmp.ne.s32.totalorder %s1120_s10, %s1116_s30  ;;  %p240_p4 = scmp.eq.s32.totalorder %s911_s14, 1 }
   0x8   : > { %s1220_s18 = scalar_select %p221_p1, %s1124_s11, %s223_s16  }
   0x9   : > { %p1222_p5 = por %p234_p2, %p233_p0  ;;  %p1226_p6 = por %p240_p4, %p239_p3 }
   0xa   : > { %1392 = sst [smem:[#allocation5_spill]] %s1220_s18  ;;  %p914_p7 = scmp.ge.s32.totalorder %s1128_s12, 1 }
   0xb   : > { %p290_p8 = scmp.lt.s32.totalorder %s1128_s12, 3 }
   0xd   : > { %p291_p9 = pnand %p914_p7, %p290_p8 }
   0xe   : > { %v1038_v0 = vld [vmem:[%s1383_s1 + $0x40] sm:$0xff] (!%p291_p9)   ;;  %v1040_v2 = vld [vmem:[%s1383_s1 + $0x48] sm:$0xff] (!%p291_p9)   ;;  %p326_p10 = scmp.lt.s32.totalorder (!%p291_p9), %s1205_s13, 1  ;;  %v1042_v4 = vld [vmem:[%s1383_s1 + $0x50] sm:$0xff] (!%p291_p9)   ;;  %v1130_v20 = vmov (!%p291_p9), 0.0   ;;  %vm1131_vm0 = vmmov (!%p291_p9), 0  }
   0xf   : > { %294 = sbr.rel (%p291_p9) target bundleno = 939 (0x3ab), region = 56  ;;  %v1039_v1 = vld [vmem:[%s1383_s1] sm:$0xff] (!%p291_p9)   ;;  %959 = vmatprep.subr.bf16.mxu0 (!%p291_p9), %v1038_v0  ;;  %v1041_v3 = vld [vmem:[%s1383_s1 + $0x8] sm:$0xff] (!%p291_p9)   ;;  %v1043_v5 = vld [vmem:[%s1383_s1 + $0x10] sm:$0xff] (!%p291_p9)   ;;  %985 = vmatprep.subr.mxu1 (!%p291_p9), %v1130_v20  ;;  %v1132_v22 = vmov (!%p291_p9), 0   ;;  %vm517_vm1 = vcmask (!%p291_p9), 1043456  }
  0x10   : > { %960 = vmatpush3.bf16.msra.mxu0 (!%p291_p9), %v1039_v1  ;;  %v1044_v6 = vld [vmem:[%s1383_s1 + $0x58] sm:$0xff] (!%p291_p9)   ;;  %v1046_v8 = vld [vmem:[%s1383_s1 + $0x60] sm:$0xff] (!%p291_p9)   ;;  %v1048_v10 = vld [vmem:[%s1383_s1 + $0x68] sm:$0xff] (!%p291_p9)   ;;  %987 = vmatprep.mubr.msk.f32.mxu1 (!%p291_p9), %vm1131_vm0, %v1130_v20  ;;  %vm513_vm2 = vcmask (!%p291_p9), 31744   ;;  %vm719_vm3 = vcmask (!%p291_p9), 1040384   ;;  %vm770_vm4 = vcmask (!%p291_p9), 1041408  }
  0x11   : > { %961 = vmatprep.subr.bf16.mxu0 (!%p291_p9), %v1040_v2  ;;  %v1045_v7 = vld [vmem:[%s1383_s1 + $0x18] sm:$0xff] (!%p291_p9)   ;;  %v1047_v9 = vld [vmem:[%s1383_s1 + $0x20] sm:$0xff] (!%p291_p9)   ;;  %v1049_v13 = vld [vmem:[%s1383_s1 + $0x28] sm:$0xff] (!%p291_p9)   ;;  %1037 = vset.pattern.permute.xlu0 (!%p291_p9), %v1132_v22  ;;  %vm715_vm5 = vcmask (!%p291_p9), 408576   ;;  %s323_s21 = sand.u32 (!%p291_p9), 1, %s1120_s10   ;;  %s958_s22 = sshll.u32 (!%p291_p9), %s1205_s13, 7 }
  0x12   : > { %v1050_v15 = vld [vmem:[%s1383_s1 + $0x70] sm:$0xff] (!%p291_p9)   ;;  %v1052_v17 = vld [vmem:[%s1383_s1 + $0x78] sm:$0xff] (!%p291_p9)   ;;  %v507_v21 = vld [vmem:[%s1386_s4] sm:$0xf] (!%p291_p9)  ;;  %s1340_s18 = scalar_lea.hbm (!%p291_p9), %s1391_s9, %s958_s22  ;;  %s838_s27 = scalar_lea.sflag (!%p291_p9), [#allocation3], %s323_s21 }
  0x13   : > { %v1051_v16 = vld [vmem:[%s1383_s1 + $0x30] sm:$0xff] (!%p291_p9)   ;;  %v1053_v18 = vld [vmem:[%s1383_s1 + $0x38] sm:$0xff] (!%p291_p9)   ;;  %510 = vperm.xlu0 (!%p291_p9), %1037, %v507_v21   ;;  %v818_v23 = vld [vmem:[%s1390_s8] sm:$0xff] (!%p291_p9) }
  0x14   : > { %962 = vmatpush3.bf16.msra.mxu0 (!%p291_p9), %v1041_v3  ;;  %v506_v28 = vld [vmem:[%s1385_s3] sm:$0xf] (!%p291_p9)  ;;  %v1057_v36 = vld [vmem:[%s1384_s2 + $0x4] ss:$8 sps:$4 sm:$0xff] (!%p291_p9)   ;;  %v1060_v40 = vld [vmem:[%s1384_s2 + $0x14] ss:$8 sps:$4 sm:$0xff] (!%p291_p9)  }
  0x15   : > { %963 = vmatprep.subr.bf16.mxu0 (!%p291_p9), %v1042_v4  ;;  %v592_v34 = vld [vmem:[%s1387_s5] sm:$0xf] (!%p291_p9)  ;;  %v1058_v41 = vld [vmem:[%s1384_s2 + $0x10] ss:$8 sps:$4 sm:$0xff] (!%p291_p9)   ;;  %v1063_v42 = vld [vmem:[%s1384_s2 + $0x24] ss:$8 sps:$4 sm:$0xff] (!%p291_p9)  }
  0x16   : > { %s327_s16 = scalar_select %p326_p10, %s1205_s13, 1  ;;  %v594_v38 = vld [vmem:[%s1389_s7] sm:$0xff]  ;;  %v679_v43 = vld [vmem:[%s1384_s2 + $0x30] sm:$0x11] }
  0x17   : > { %821 = vperm.xlu0 %1037, %v818_v23   ;;  %v1055_v39 = vld [vmem:[%s1384_s2] ss:$8 sps:$4 sm:$0xff]   ;;  %v945_v45 = vcombine.high %v679_v43, %v679_v43  ;;  %v944_v46 = vcombine.low %v679_v43, %v679_v43  ;;  %s1133_s13 = smov [#allocation2]  }
  0x18   : > { %s956_s24 = sshll.u32 %s327_s16, 3  ;;  %964 = vmatpush3.bf16.msra.mxu0 %v1043_v5  ;;  %v1061_v44 = vld [vmem:[%s1384_s2 + $0x20] ss:$8 sps:$4 sm:$0xff]   ;;  %s915_s16 = sshll.u32 %s323_s21, 3 }
  0x19   : > { %965 = vmatprep.subr.bf16.mxu0 %v1044_v6  ;;  %s330_s17 = scalar_lea.vmem %s1382_s0, %s956_s24  ;;  %v721_v47 = vsel %vm719_vm3, %v944_v46, 0  ;;  %v671_v52 = vld [vmem:[%s1388_s6] sm:$0xf]  ;;  %s325_s23 = scalar_lea.vmem [#allocation2], %s915_s16 }
  0x1a   : > { %v332_v11 = vld [vmem:[%s330_s17] sm:$0xff]  ;;  %s852_s25 = sshll.u32 %s325_s23, 4  ;;  %s1070_s29 = sshll.u32 %s1133_s13, 4  ;;  %s1342_s25 = int_to_ptr.vmem [resolvable:$true] %s852_s25  ;;  %s1071_s29 = int_to_ptr.vmem [resolvable:$false] %s1070_s29 }
  0x1b   : > { %v334_v12 = vcombine.high %v332_v11, %v332_v11  ;;  %v336_v19 = vpack.c.bf16 %v332_v11, %v332_v11  ;;  %s1066_s28 = scalar_lea.vmem %s1342_s25, 128  ;;  %s1072_s14 = scalar_lea.vmem %s1071_s29, 256 }
  0x1c   : > { %966 = vmatpush3.bf16.msra.mxu0 %v1045_v7  ;;  %p1067_p11 = scmp.ne.s32.totalorder %s1342_s25, %s1066_s28  ;;  %p1073_p0 = scmp.lt.s32.totalorder %s1342_s25, %s1071_s29 }
  0x1d   : > { %967 = vmatprep.subr.bf16.mxu0 %v1046_v8  ;;  %v1273_v14 = vpack.c.bf16 %v334_v12, %v334_v12  ;;  %v772_v51 = vsel %vm770_vm4, %v336_v19, 0  ;;  %p1074_p1 = scmp.lt.s32.totalorder %s1072_s14, %s1066_s28 }
  0x1e   : > { %p1068_p12 = pnand %p1067_p11, %p1222_p5 }
  0x1f   : > { %498 = vmatprep.mubr.bf16.mxu0 %v1273_v14  ;;  %p1075_p2 = por %p1074_p1, %p1073_p0 }
  0x20   : > { %968 = vmatpush3.bf16.msra.mxu0 %v1047_v9  ;;  %p1069_p13 = pneg %p1068_p12 }
  0x21   : > { %969 = vmatprep.subr.bf16.mxu0 %v1048_v10 }
  0x22   : > { %p1076_p3 = pnand %p1075_p2, %p1069_p13 }
  0x24   : > { %970 = vmatpush3.bf16.msra.mxu0 %v1049_v13 }
  0x25   : > { %971 = vmatprep.subr.bf16.mxu0 %v1050_v15 }
  0x28   : > { %972 = vmatpush3.bf16.msra.mxu0 %v1051_v16 }
  0x29   : > { %973 = vmatprep.subr.bf16.mxu0 %v1052_v17 }
  0x2c   : > { %974 = vmatpush3.bf16.msra.mxu0 %v1053_v18 }
  0x2f   : > { %499 = vmatmul.mubr.bf16.vlgmr.msra.gmra.mrb[0].mxu0 %v336_v19 }
  0x92   : > { %v511_v30 = vpop.permute.xlu0 %510 }
  0x96   : > { %v822_v60 = vpop.permute.xlu0 %821 }
 0x102   : > { %v975_v24 = vpop.f32.mrb[0].mxu0 }
 0x103   : > { %v976_v25 = vpop.f32.mrb[1].mxu0 }
 0x104   : > { %v977_v26 = vadd.f32 %v976_v25, %v975_v24  ;;  %v978_v27 = vpop.f32.mrb[2].mxu0 }
 0x105   : > { %v979_v29 = vpop.f32.mrb[3].mxu0 }
 0x106   : > { %986 = vmatpush3.msk.msra.mxu1 %vm517_vm1, %v977_v26 }
 0x107   : > { %988 = vmatmul.mubr.msk.f32.vlgmr.msra.gmra.mrb[0].mxu1 %vm513_vm2, %v506_v28  ;;  %990 = vmatprep.subr.mxu1 %v1130_v20 }
 0x108   : > { %992 = vmatprep.mubr.msk.f32.mxu1 %vm1131_vm0, %v1130_v20 }
 0x1da   : > { %v587_v31 = vpop.f32.mrb[0].mxu1 }
 0x1db   : > { %v588_v32 = vadd.f32 %v587_v31, %v511_v30  ;;  %v989_v33 = vpop.f32.mrb[1].mxu1 }
 0x1dd   : > { %v591_v35 = vmax.f32 %v588_v32, 0.0 }
 0x1df   : > { %v593_v37 = vmul.f32 %v592_v34, %v591_v35 }
 0x1e1   : > { %991 = vmatpush3.msk.msra.mxu1 %vm517_vm1, %v593_v37 }
 0x1e2   : > { %993 = vmatmul.mubr.msk.f32.vlgmr.msra.gmra.mrb[2].mxu1 %vm513_vm2, %v594_v38  ;;  %726 = vmatprep.subr.bf16.mxu1 %v1057_v36 }
 0x1e3   : > { %727 = vmatpush1.bf16.msra.mxu1 %v1055_v39  ;;  %758 = vmatprep.mubr.bf16.mxu1 %v1132_v22 }
 0x1e4   : > { %728 = vmatprep.subr.bf16.mxu1 %v1060_v40 }
 0x1e7   : > { %729 = vmatpush1.bf16.msra.mxu1 %v1058_v41 }
 0x1e8   : > { %730 = vmatprep.subr.bf16.mxu1 %v1063_v42 }
 0x1eb   : > { %731 = vmatpush1.bf16.msra.mxu1 %v1061_v44 }
 0x1ec   : > { %946 = vmatprep.subr.msk.bf16.mxu1 %vm719_vm3, %v945_v45 }
 0x1ef   : > { %733 = vmatpush1.bf16.msra.mxu1 %v721_v47 }
 0x1f0   : > { %948 = vmatprep.subr.msk.bf16.mxu1 %vm770_vm4, %v1273_v14 }
 0x2b5   : > { %v667_v48 = vpop.f32.mrb[2].mxu1 }
 0x2b6   : > { %v672_v49 = vpack.c.bf16 %v667_v48, %v667_v48  ;;  %v994_v50 = vpop.f32.mrb[3].mxu1 }
 0x2b8   : > { %947 = vmatmul.mubr.msk.bf16.vlgmr.msra.gmra.mrb[4].mxu1 %vm715_vm5, %v672_v49 }
 0x2b9   : > { %778 = vmatpush1.bf16.msra.mxu1 %v772_v51  ;;  %809 = vmatprep.mubr.bf16.mxu1 %v1132_v22 }
 0x2c0   : > { %949 = vmatmul.mubr.msk.bf16.vlgmr.msra.gmra.mrb[8].mxu1 %vm513_vm2, %v671_v52 }
 0x38b   : > { %v760_v53 = vpop.f32.mrb[4].mxu1 }
 0x38c   : > { %v762_v54 = vpop.f32.mrb[5].mxu1 }
 0x38d   : > { %v764_v55 = vpop.f32.mrb[6].mxu1 }
 0x38e   : > { %v765_v56 = vpop.f32.mrb[7].mxu1 }
 0x393   : > { %v811_v57 = vpop.f32.mrb[8].mxu1 }
 0x394   : > { %v812_v58 = vadd.f32 %v811_v57, %v760_v53  ;;  %v813_v59 = vpop.f32.mrb[9].mxu1 }
 0x395   : > { %v814_v61 = vadd.f32 %v813_v59, %v762_v54  ;;  %v815_v62 = vpop.f32.mrb[10].mxu1 }
 0x396   : > { %v824_v63 = vadd.f32 %v822_v60, %v812_v58  ;;  %v816_v0 = vpop.f32.mrb[11].mxu1 }
 0x397   : > { %v825_v1 = vadd.f32 %v822_v60, %v814_v61 }
 0x398   : > { %v826_v2 = vmax.f32 %v824_v63, 0.0 }
 0x399   : > { %v827_v3 = vmax.f32 %v825_v1, 0.0 }
 0x39b   : > { %v957_v4 = vpack.c.bf16 %v827_v3, %v826_v2 }
 0x39d   : > { %836 = vst [vmem:[%s325_s23] sm:$0xff] %v957_v4 }
 0x39e   : > { %1079 = shalt.err (!%p1076_p3)
}
 0x39f   : > { %s1080_s17 = scalar_lea.hbm %s1340_s18, 128  ;;  %s1084_s22 = scalar_lea.hbm %s1391_s9, 256 }
 0x3a0   : > { %p1081_p4 = scmp.ne.s32.totalorder %s1340_s18, %s1080_s17  ;;  %p1085_p9 = scmp.lt.u32.totalorder %s1340_s18, %s1391_s9 }
 0x3a1   : > { %p1086_p10 = scmp.lt.u32.totalorder %s1084_s22, %s1080_s17  ;;  %p1088_p12 = scmp.lt.u32.totalorder %s1080_s17, %s1340_s18 }
 0x3a2   : > { %p1082_p7 = pnand %p1081_p4, %p1222_p5 }
 0x3a3   : > { %p1087_p11 = por %p1086_p10, %p1085_p9 }
 0x3a4   : > { %p1083_p8 = pneg %p1082_p7 }
 0x3a5   : > { %p1089_p13 = por %p1088_p12, %p1087_p11 }
 0x3a7   : > { %p1090_p0 = pnand %p1089_p13, %p1083_p8 }
 0x3a9   : > { %1093 = shalt.err (!%p1090_p0)
}
 0x3aa   : > { %995 = dma.vmem_to_hbm [thread:$0]  (%p1222_p5), %s1342_s25, 128, %s1340_s18, %s838_s27  }
 0x3ab PF: > { %p1001_p1 = scmp.ge.s32.totalorder %s1128_s12, 2  ;;  %s864_s26 = sand.u32 1, %s1116_s30  }
 0x3ac   : > { %s865_s28 = scalar_lea.sflag [#allocation3], %s864_s26 }
 0x3ad   : > { %p998_p2 = pnand %p1001_p1, %p1226_p6 }
 0x3af   : > { %1111 = dma.done.wait (!%p998_p2), %s865_s28, 128  }
 0x3b0   : > { %1113 = vsyncadd (!%p998_p2), %s865_s28, 4294967168  ;;  %s1395_s13 = sld [smem:[#allocation5_spill]]  ;;  %p19_p3 = scmp.ge.s32.totalorder %s1209_s15, 4  }
 0x3b1   : > { %s1396_s30 = smov %s1120_s10  ;;  %s1397_s10 = smov %s1124_s11 }
 0x3b2   : > { %s1399_s12 = smov %s1209_s15  ;;  %21 = sbr.rel (!%p19_p3) target bundleno = 3 (0x3), region = 91 }
 0x3b6   : > { %s1398_s11 = smov %s1395_s13 }
 0x3b9   :  { %870 = vsyncpa [#allocation3], 1 }
 0x3ba   :  { %872 = vsyncpa [#allocation3 + $0x1], 1 }

</bundles_post_ra>
